<compile_context>
chip_gen: v5e
topology: v5e:2x2
jax: 0.10.0
libtpu: 0.0.40
codegen_flags: <defaults>
</compile_context>

<pallas_src>
import functools

import jax
import jax.numpy as jnp
from jax.experimental import pallas as pl
from jax.experimental.pallas import tpu as pltpu

EPS = 1e-5
NEG_SLOPE = 0.2
LANE = 128


def _round_up(x, m):
    return (x + m - 1) // m * m


def _unet_down_kernel(p_ref, w_ref, o_ref, *, normalize=True):
    # p_ref: (1, K_pad, P)      bf16  K-major im2col patches, one batch element
    # w_ref: (Cout_pad, K_pad)  bf16  reshaped + zero-padded conv weight
    # o_ref: (1, Cout, P)       f32   channel-major output (lane axis = spatial)
    cout = o_ref.shape[1]

    patches = p_ref[0]                       # (K_pad, P) bf16
    w = w_ref[...]                           # (Cout_pad, K_pad) bf16

    # Conv as one MXU matmul with f32 accumulation; result is already
    # channel-major so the store is lane-dense and transpose-free.
    y = jnp.dot(w, patches, preferred_element_type=jnp.float32)  # (Cout_pad, P)

    if normalize:
        # InstanceNorm2d (affine=False, biased variance, eps inside rsqrt),
        # one-pass sums so y is read once.
        p_len = y.shape[1]
        inv_n = 1.0 / p_len
        s1 = jnp.sum(y, axis=1, keepdims=True)           # (Cout_pad, 1)
        s2 = jnp.sum(y * y, axis=1, keepdims=True)       # (Cout_pad, 1)
        mean = s1 * inv_n
        var = jnp.maximum(s2 * inv_n - mean * mean, 0.0)
        inv_std = jax.lax.rsqrt(var + EPS)               # EUP op on a (C,1) row
        y = (y - mean) * inv_std

    # LeakyReLU(0.2).
    out = jnp.where(y >= 0, y, NEG_SLOPE * y)

    # Only the first `cout` rows are real channels (rest is MXU-alignment
    # padding with identically-zero output); write them channel-major.
    o_ref[0] = out[:cout, :].astype(o_ref.dtype)


def _im2col_kmajor(x, k=4, stride=2, pad=1):
    # x: (N, C, H, W) -> patches (N, C*k*k, Ho*Wo); the (C, kh, kw) flattening
    # order matches PyTorch's weight layout (Cout, Cin, kh, kw).
    N, C, H, W = x.shape
    Ho = (H + 2 * pad - k) // stride + 1
    Wo = (W + 2 * pad - k) // stride + 1
    x_pad = jnp.pad(x, ((0, 0), (0, 0), (pad, pad), (pad, pad)))
    cols = []
    for kh in range(k):
        for kw in range(k):
            sl = x_pad[:, :, kh:kh + stride * Ho:stride, kw:kw + stride * Wo:stride]
            cols.append(sl)                               # (N, C, Ho, Wo)
    stacked = jnp.stack(cols, axis=2)                     # (N, C, k*k, Ho, Wo)
    patches = stacked.reshape(N, C * k * k, Ho * Wo)      # (N, K, P)
    return patches, Ho, Wo


def unet_down(x, weight, normalize=True, dropout=0.0):
    """x: (N, Cin, H, W) f32; weight: (Cout, Cin, 4, 4) f32 (PyTorch layout)."""
    # Dropout in forward/eval is identity; training-mode dropout not modeled.
    del dropout
    N, Cin, H, W = x.shape
    Cout = weight.shape[0]
    K = Cin * 16
    K_pad = max(_round_up(K, LANE), LANE)
    Cout_pad = max(_round_up(Cout, LANE), LANE)

    patches, Ho, Wo = _im2col_kmajor(x)                   # (N, K, P) f32
    P = Ho * Wo

    # bf16 MXU operands, zero-padded to 128-aligned K and Cout. Zero-padding K
    # is numerically exact; padded Cout channels produce zeros and are never
    # written to the output.
    patches = jnp.pad(patches, ((0, 0), (0, K_pad - K), (0, 0)))
    patches = patches.astype(jnp.bfloat16)                # halves HBM->VMEM DMA
    w2d = weight.reshape(Cout, K)
    w2d = jnp.pad(w2d, ((0, Cout_pad - Cout), (0, K_pad - K))).astype(jnp.bfloat16)

    kernel = functools.partial(_unet_down_kernel, normalize=normalize)

    out = pl.pallas_call(
        kernel,
        out_shape=jax.ShapeDtypeStruct((N, Cout, P), jnp.float32),
        grid_spec=pltpu.PrefetchScalarGridSpec(
            num_scalar_prefetch=0,
            grid=(N,),
            in_specs=[
                pl.BlockSpec((1, K_pad, P), lambda n: (n, 0, 0)),
                pl.BlockSpec((Cout_pad, K_pad), lambda n: (0, 0)),
            ],
            out_specs=pl.BlockSpec((1, Cout, P), lambda n: (n, 0, 0)),
        ),
        compiler_params=pltpu.CompilerParams(
            dimension_semantics=("parallel",),
            vmem_limit_bytes=32 * 1024 * 1024,
        ),
    )(patches, w2d)

    # Channel-major output only needs a metadata reshape back to NCHW.
    return out.reshape(N, Cout, Ho, Wo)


def _reference(x, weight, normalize=True):
    """Plain-JAX f32 reference matching the PyTorch module's forward."""
    y = jax.lax.conv_general_dilated(
        x, weight, window_strides=(2, 2), padding=((1, 1), (1, 1)),
        dimension_numbers=("NCHW", "OIHW", "NCHW"))
    if normalize:
        mean = jnp.mean(y, axis=(2, 3), keepdims=True)
        var = jnp.mean((y - mean) ** 2, axis=(2, 3), keepdims=True)
        y = (y - mean) * jax.lax.rsqrt(var + EPS)
    return jnp.where(y >= 0, y, NEG_SLOPE * y)


if __name__ == "__main__":
    key = jax.random.PRNGKey(0)
    kx, kw = jax.random.split(key)

    in_size, out_size = 4, 8
    N, H, W = 2, 16, 16

    x = jax.random.normal(kx, (N, in_size, H, W), dtype=jnp.float32)
    fan_in = in_size * 4 * 4
    weight = jax.random.normal(kw, (out_size, in_size, 4, 4),
                               dtype=jnp.float32) * (1.0 / fan_in) ** 0.5

    y = unet_down(x, weight, normalize=True, dropout=0.0)
    jax.block_until_ready(y)
    assert y.shape == (N, out_size, H // 2, W // 2), y.shape

    # Loose tolerance vs the f32 reference: the bf16 MXU inputs give ~1e-2
    # absolute drift on normalized-scale outputs.
    y_ref = _reference(x, weight, normalize=True)
    err = float(jnp.max(jnp.abs(y - y_ref)))
    assert err < 0.2, f"max abs err vs reference too large: {err}"

    print("KERNEL_OK")
</pallas_src>

<mosaic_0001>
module attributes {stable_mosaic.version = 11 : i64} {
  func.func @_unet_down_kernel(%arg0: i32, %arg1: memref<1x128x64xbf16, #tpu.memory_space<vmem>>, %arg2: memref<128x128xbf16, #tpu.memory_space<vmem>>, %arg3: memref<1x8x64xf32, #tpu.memory_space<vmem>>) attributes {dimension_semantics = [#tpu.dimension_semantics<parallel>], iteration_bounds = array<i64: 2>, scalar_prefetch = 0 : i64, scratch_operands = 0 : i64, tpu.core_type = #tpu.core_type<tc>, window_params = [{transform_indices = @transform_0, window_bounds = array<i64: 1, 128, 64>}, {pipeline_mode = #tpu.pipeline_mode<synchronous>, transform_indices = @transform_1, window_bounds = array<i64: 128, 128>}, {transform_indices = @transform_2, window_bounds = array<i64: 1, 8, 64>}]} {
    %c0 = arith.constant 0 : index
    %c0_0 = arith.constant 0 : index
    %c0_1 = arith.constant 0 : index
    %0 = vector.load %arg1[%c0, %c0_0, %c0_1] : memref<1x128x64xbf16, #tpu.memory_space<vmem>>, vector<1x128x64xbf16>
    %1 = vector.shape_cast %0 : vector<1x128x64xbf16> to vector<128x64xbf16>
    %c0_2 = arith.constant 0 : index
    %c0_3 = arith.constant 0 : index
    %2 = vector.load %arg2[%c0_2, %c0_3] : memref<128x128xbf16, #tpu.memory_space<vmem>>, vector<128x128xbf16>
    %cst = arith.constant dense<0.000000e+00> : vector<128x64xf32>
    %3 = tpu.matmul %2, %1, %cst {dimension_numbers = #tpu.dot_dimension_numbers<[1], [0], [0], [1], [0, 0, 1, 1], [], []>} : vector<128x128xbf16>, vector<128x64xbf16>, vector<128x64xf32> -> vector<128x64xf32>
    %cst_4 = arith.constant dense<0.000000e+00> : vector<128xf32>
    %4 = vector.multi_reduction <add>, %3, %cst_4 [1] : vector<128x64xf32> to vector<128xf32>
    %5 = vector.shape_cast %4 : vector<128xf32> to vector<128x1xf32>
    %6 = arith.mulf %3, %3 : vector<128x64xf32>
    %cst_5 = arith.constant dense<0.000000e+00> : vector<128xf32>
    %7 = vector.multi_reduction <add>, %6, %cst_5 [1] : vector<128x64xf32> to vector<128xf32>
    %8 = vector.shape_cast %7 : vector<128xf32> to vector<128x1xf32>
    %cst_6 = arith.constant 1.562500e-02 : f32
    %9 = vector.broadcast %cst_6 : f32 to vector<128x1xf32>
    %10 = arith.mulf %5, %9 : vector<128x1xf32>
    %cst_7 = arith.constant 1.562500e-02 : f32
    %11 = vector.broadcast %cst_7 : f32 to vector<128x1xf32>
    %12 = arith.mulf %8, %11 : vector<128x1xf32>
    %13 = arith.mulf %10, %10 : vector<128x1xf32>
    %14 = arith.subf %12, %13 : vector<128x1xf32>
    %cst_8 = arith.constant 0.000000e+00 : f32
    %15 = vector.broadcast %cst_8 : f32 to vector<128x1xf32>
    %16 = arith.maximumf %14, %15 : vector<128x1xf32>
    %cst_9 = arith.constant 9.99999974E-6 : f32
    %17 = vector.broadcast %cst_9 : f32 to vector<128x1xf32>
    %18 = arith.addf %16, %17 : vector<128x1xf32>
    %19 = math.rsqrt %18 : vector<128x1xf32>
    %20 = vector.broadcast %10 : vector<128x1xf32> to vector<128x64xf32>
    %21 = arith.subf %3, %20 : vector<128x64xf32>
    %22 = vector.broadcast %19 : vector<128x1xf32> to vector<128x64xf32>
    %23 = arith.mulf %21, %22 : vector<128x64xf32>
    %cst_10 = arith.constant 0.000000e+00 : f32
    %24 = vector.broadcast %cst_10 : f32 to vector<128x64xf32>
    %25 = arith.cmpf oge, %23, %24 : vector<128x64xf32>
    %cst_11 = arith.constant 2.000000e-01 : f32
    %26 = vector.broadcast %cst_11 : f32 to vector<128x64xf32>
    %27 = arith.mulf %26, %23 : vector<128x64xf32>
    %28 = arith.select %25, %23, %27 : vector<128x64xi1>, vector<128x64xf32>
    %29 = vector.extract_strided_slice %28 {offsets = [0, 0], sizes = [8, 64], strides = [1, 1]} : vector<128x64xf32> to vector<8x64xf32>
    %c0_12 = arith.constant 0 : index
    %c0_13 = arith.constant 0 : index
    %c0_14 = arith.constant 0 : index
    %30 = vector.load %arg3[%c0_12, %c0_13, %c0_14] : memref<1x8x64xf32, #tpu.memory_space<vmem>>, vector<1x8x64xf32>
    %31 = vector.shape_cast %30 : vector<1x8x64xf32> to vector<8x64xf32>
    %32 = vector.shape_cast %29 : vector<8x64xf32> to vector<1x8x64xf32>
    tpu.vector_store %arg3[%c0_12, %c0_13, %c0_14], %32 {strides = array<i32>} : memref<1x8x64xf32, #tpu.memory_space<vmem>>, vector<1x8x64xf32>,
    return
  }
  func.func @transform_0(%arg0: i32) -> (i32, i32, i32) {
    %c0_i32 = arith.constant 0 : i32
    %c0_i32_0 = arith.constant 0 : i32
    %c0_i32_1 = arith.constant 0 : i32
    return %arg0, %c0_i32, %c0_i32_0 : i32, i32, i32
  }
  func.func @transform_1(%arg0: i32) -> (i32, i32) {
    %c0_i32 = arith.constant 0 : i32
    %c0_i32_0 = arith.constant 0 : i32
    %c0_i32_1 = arith.constant 0 : i32
    return %c0_i32, %c0_i32_0 : i32, i32
  }
  func.func @transform_2(%arg0: i32) -> (i32, i32, i32) {
    %c0_i32 = arith.constant 0 : i32
    %c0_i32_0 = arith.constant 0 : i32
    %c0_i32_1 = arith.constant 0 : i32
    return %arg0, %c0_i32, %c0_i32_0 : i32, i32, i32
  }
}

</mosaic_0001>

<bundles_post_ra>
// kernel: tpu_custom_call.1
= control target key start
LH: loop header
LB: loop body
LE: loop exit
PB: predicated region body
PF: predicated region fallthrough
CT: control target
= control target key end

     0   :  { %7 = vsyncpa [#allocation3], 0  ;;  %s767_s0 = inlined_call_operand.vmem [shape: bf16[2,128,64], index: 0, kind: input, shape index: {}]   ;;  %s768_s1 = inlined_call_operand.vmem [shape: bf16[128,128], index: 1, kind: input, shape index: {}]   ;;  %s769_s2 = inlined_call_operand.hbm [shape: f32[2,8,64], index: 2, kind: output, shape index: {}]  }
   0x1   :  { %9 = vsyncpa [#allocation3 + $0x1], 0  ;;  %s645_s9 = smov 0   ;;  %s647_s10 = smov 0  }
   0x2   :  { %s649_s11 = smov 0   ;;  %s651_s12 = smov 0  }
   0x3 LB: > { %s666_s13 = sadd.s32 4294967295, %s628_s12   ;;  %s409_s14 = sadd.s32 4294967294, %s628_s12   ;;  %s628_s12 = sphi %s651_s12, %s775_s12   ;;  %s624_s11 = sphi %s649_s11, %s774_s11   ;;  %s620_s10 = sphi %s647_s10, %s773_s10   ;;  %s616_s9 = sphi %s645_s9, %s772_s9  }
   0x4   : > { %s670_s15 = sadd.s32 1, %s628_s12   ;;  %s69_s16 = sadd.s32 1, %s624_s11 }
   0x5   : > { %s66_s17 = ssub.s32 %s628_s12, %s670_s15  ;;  %p79_p0 = scmp.ne.s32.totalorder %s624_s11, %s620_s10 }
   0x6   : > { %p67_p1 = scmp.eq.s32.totalorder %s66_s17, 0  ;;  %p80_p2 = scmp.eq.s32.totalorder %s666_s13, 1 }
   0x7   : > { %p85_p3 = scmp.ne.s32.totalorder %s620_s10, %s616_s9  ;;  %p86_p4 = scmp.eq.s32.totalorder %s409_s14, 1 }
   0x8   : > { %s681_s18 = scalar_select %p67_p1, %s624_s11, %s69_s16  }
   0x9   : > { %p683_p5 = por %p80_p2, %p79_p0  ;;  %p687_p6 = por %p86_p4, %p85_p3 }
   0xa   : > { %p412_p7 = scmp.ge.s32.totalorder %s628_s12, 1  ;;  %p115_p8 = scmp.lt.s32.totalorder %s628_s12, 3 }
   0xc   : > { %p116_p9 = pnand %p412_p7, %p115_p8 }
   0xd   : > { %p137_p10 = scmp.lt.s32.totalorder (!%p116_p9), %s666_s13, 1  ;;  %s134_s23 = sand.u32 (!%p116_p9), 1, %s620_s10  }
   0xe   : > { %119 = sbr.rel (%p116_p9) target bundleno = 340 (0x154), region = 28  ;;  %s413_s24 = sshll.u32 (!%p116_p9), %s134_s23, 3 }
   0xf   : > { %s136_s29 = scalar_lea.vmem (!%p116_p9), [#allocation2], %s413_s24  ;;  %s586_s8 = scalar_lea.hbm (!%p116_p9), %s769_s2, 16 }
  0x10   : > { %s347_s30 = sshll.u32 (!%p116_p9), %s136_s29, 4  ;;  %s348_s30 = int_to_ptr.vmem [resolvable:$true] %s347_s30 }
  0x13   : > { %s138_s21 = scalar_select %p137_p10, %s666_s13, 1  ;;  %v493_v8 = vld [vmem:[%s768_s1] sm:$0xff]  ;;  %v499_v10 = vld [vmem:[%s768_s1 + $0x30] sm:$0xff]  ;;  %v498_v12 = vld [vmem:[%s768_s1 + $0x28] sm:$0xff]  ;;  %vm304_vm0 = vcmask 523264  }
  0x14   : > { %v497_v9 = vld [vmem:[%s768_s1 + $0x20] sm:$0xff]  ;;  %v495_v11 = vld [vmem:[%s768_s1 + $0x10] sm:$0xff]  ;;  %v500_v13 = vld [vmem:[%s768_s1 + $0x38] sm:$0xff] }
  0x15   : > { %s484_s22 = sshll.u32 %s138_s21, 6  ;;  %v494_v14 = vld [vmem:[%s768_s1 + $0x8] sm:$0xff]  ;;  %v496_v15 = vld [vmem:[%s768_s1 + $0x18] sm:$0xff] }
  0x16   : > { %s698_s25 = scalar_lea.vmem %s767_s0, %s484_s22 }
  0x17   : > { %v492_v0 = vld [vmem:[%s698_s25 + $0x38] sm:$0xff]  ;;  %v491_v1 = vld [vmem:[%s698_s25 + $0x30] sm:$0xff]  ;;  %v490_v2 = vld [vmem:[%s698_s25 + $0x28] sm:$0xff] }
  0x18   : > { %270 = vmatpush.bf16.msra.mxu0 %v492_v0  ;;  %502 = vmatpush.bf16.msra.mxu2 %v492_v0  ;;  %v489_v3 = vld [vmem:[%s698_s25 + $0x20] sm:$0xff]  ;;  %v488_v4 = vld [vmem:[%s698_s25 + $0x18] sm:$0xff]  ;;  %v487_v5 = vld [vmem:[%s698_s25 + $0x10] sm:$0xff] }
  0x19   : > { %503 = vmatpush.bf16.msra.mxu3 %v492_v0  ;;  %501 = vmatpush.bf16.msra.mxu1 %v492_v0  ;;  %v486_v6 = vld [vmem:[%s698_s25 + $0x8] sm:$0xff]  ;;  %v485_v7 = vld [vmem:[%s698_s25] sm:$0xff]  ;;  %s481_s25 = sshll.u32 %s666_s13, 3  ;;  %s335_s13 = scalar_lea.sflag [#allocation3], %s134_s23 }
  0x1a   : > { %s345_s28 = scalar_lea.hbm %s769_s2, %s481_s25 }
  0x1b   : > { %s349_s3 = sshll.u32 %s345_s28, 4  ;;  %s350_s3 = int_to_ptr.hbm [resolvable:$true] %s349_s3 }
  0x1c   : > { %271 = vmatpush.bf16.msra.mxu0 %v491_v1  ;;  %505 = vmatpush.bf16.msra.mxu2 %v491_v1  ;;  %s580_s4 = sshra.s32 %s350_s3, 4  ;;  %s581_s4 = int_to_ptr.hbm [resolvable:$true] %s580_s4 }
  0x1d   : > { %506 = vmatpush.bf16.msra.mxu3 %v491_v1  ;;  %504 = vmatpush.bf16.msra.mxu1 %v491_v1  ;;  %s582_s5 = scalar_lea.hbm %s581_s4, 8  ;;  %p587_p0 = scmp.lt.s32.totalorder %s581_s4, %s769_s2 }
  0x1e   : > { %p583_p11 = scmp.ne.s32.totalorder %s581_s4, %s582_s5  ;;  %p588_p1 = scmp.lt.s32.totalorder %s586_s8, %s582_s5 }
  0x20   : > { %272 = vmatpush.bf16.msra.mxu0 %v490_v2  ;;  %508 = vmatpush.bf16.msra.mxu2 %v490_v2  ;;  %p584_p12 = pnand %p583_p11, %p683_p5  ;;  %p589_p2 = por %p588_p1, %p587_p0 }
  0x21   : > { %509 = vmatpush.bf16.msra.mxu3 %v490_v2  ;;  %507 = vmatpush.bf16.msra.mxu1 %v490_v2 }
  0x22   : > { %p585_p13 = pneg %p584_p12 }
  0x24   : > { %273 = vmatpush.bf16.msra.mxu0 %v489_v3  ;;  %511 = vmatpush.bf16.msra.mxu2 %v489_v3  ;;  %p590_p3 = pnand %p589_p2, %p585_p13 }
  0x25   : > { %512 = vmatpush.bf16.msra.mxu3 %v489_v3  ;;  %510 = vmatpush.bf16.msra.mxu1 %v489_v3 }
  0x28   : > { %274 = vmatpush.bf16.msra.mxu0 %v488_v4  ;;  %514 = vmatpush.bf16.msra.mxu2 %v488_v4 }
  0x29   : > { %515 = vmatpush.bf16.msra.mxu3 %v488_v4  ;;  %513 = vmatpush.bf16.msra.mxu1 %v488_v4 }
  0x2c   : > { %275 = vmatpush.bf16.msra.mxu0 %v487_v5  ;;  %517 = vmatpush.bf16.msra.mxu2 %v487_v5 }
  0x2d   : > { %518 = vmatpush.bf16.msra.mxu3 %v487_v5  ;;  %516 = vmatpush.bf16.msra.mxu1 %v487_v5 }
  0x30   : > { %276 = vmatpush.bf16.msra.mxu0 %v486_v6  ;;  %520 = vmatpush.bf16.msra.mxu2 %v486_v6 }
  0x31   : > { %521 = vmatpush.bf16.msra.mxu3 %v486_v6  ;;  %519 = vmatpush.bf16.msra.mxu1 %v486_v6 }
  0x34   : > { %277 = vmatpush.bf16.msra.mxu0 %v485_v7  ;;  %523 = vmatpush.bf16.msra.mxu2 %v485_v7 }
  0x35   : > { %524 = vmatpush.bf16.msra.mxu3 %v485_v7  ;;  %522 = vmatpush.bf16.msra.mxu1 %v485_v7 }
  0x37   : > { %278 = vmatmul.bf16.vlgmr.msra.gmra.mxu0 %v493_v8  ;;  %291 = vmatmul.bf16.vlgmr.msra.gmra.mxu2 %v497_v9 }
  0x38   : > { %297 = vmatmul.bf16.vlgmr.msra.gmra.mxu3 %v499_v10  ;;  %285 = vmatmul.bf16.vlgmr.msra.gmra.mxu1 %v495_v11 }
  0x47   : > { %294 = vmatmul.bf16.gmra.mxu2 %v498_v12  ;;  %282 = vmatmul.bf16.gmra.mxu0 %v494_v14 }
  0x48   : > { %300 = vmatmul.bf16.gmra.mxu3 %v500_v13  ;;  %288 = vmatmul.bf16.gmra.mxu1 %v496_v15 }
  0xb4   : > { %v279_v16 = vpop.f32.mrf.mxu0 }
  0xb5   : > { %v305_v17 = vsel %vm304_vm0, %v279_v16, 0.0  ;;  %v308_v18 = vmul.f32 %v279_v16, %v279_v16  ;;  %v286_v25 = vpop.f32.mrf.mxu1 }
  0xb6   : > { %306 = vadd.xlane.f32.xlu0 %v305_v17 }
  0xb7   : > { %v309_v22 = vsel %vm304_vm0, %v308_v18, 0.0 }
  0xba   : > { %v292_v19 = vpop.f32.mrf.mxu2 }
  0xbb   : > { %v298_v20 = vpop.f32.mrf.mxu3 }
  0xbc   : > { %v281_v21 = vpop.f32.mrf.mxu0 }
  0xbd   : > { %v287_v26 = vpop.f32.mrf.mxu1 }
  0xbe   : > { %310 = vadd.xlane.f32.xlu0 %v309_v22 }
  0xc2   : > { %v293_v23 = vpop.f32.mrf.mxu2 }
  0xc3   : > { %v299_v24 = vpop.f32.mrf.mxu3 }
  0xc4   : > { %v283_v27 = vpop.f32.mrf.mxu0 }
  0xc5   : > { %v289_v28 = vpop.f32.mrf.mxu1 }
  0xca   : > { %v295_v29 = vpop.f32.mrf.mxu2 }
  0xcb   : > { %v301_v30 = vpop.f32.mrf.mxu3 }
  0xcc   : > { %v284_v31 = vpop.f32.mrf.mxu0 }
  0xcd   : > { %v290_v33 = vpop.f32.mrf.mxu1 }
  0xd2   : > { %v296_v34 = vpop.f32.mrf.mxu2 }
  0xd3   : > { %v302_v35 = vpop.f32.mrf.mxu3 }
 0x129   : > { %v307_v32 = vpop.xlane.xlu0 %306 }
 0x12a   : > { %v312_v36 = vmul.f32 0.015625, %v307_v32 }
 0x12c   : > { %v314_v38 = vmul.f32 %v312_v36, %v312_v36  ;;  %v328_v49 = vsub.f32 %v279_v16, %v312_v36 }
 0x131   : > { %v311_v37 = vpop.xlane.xlu0 %310 }
 0x132   : > { %v313_v39 = vmul.f32 0.015625, %v311_v37 }
 0x134   : > { %v315_v40 = vsub.f32 %v313_v39, %v314_v38 }
 0x136   : > { %v316_v41 = vmax.f32 %v315_v40, 0.0 }
 0x138   : > { %v317_v42 = vadd.f32 1e-05, %v316_v41 }
 0x13a   : > { %564 = vrsqrt.f32 %v317_v42  ;;  %vm324_vm2 = vweird.f32 %v317_v42 }
 0x140   : > { %v565_v43 = vpop.eup %564 }
 0x141   : > { %v319_v44 = vmul.f32 %v565_v43, %v317_v42  ;;  %vm325_vm1 = vweird.f32 %v565_v43 }
 0x142   : > { %vm326_vm3 = vmor %vm324_vm2, %vm325_vm1 }
 0x143   : > { %v320_v45 = vmul.f32 %v565_v43, %v319_v44 }
 0x145   : > { %v321_v46 = vmul.f32 0.5, %v320_v45 }
 0x147   : > { %v322_v47 = vsub.f32 1.5, %v321_v46 }
 0x149   : > { %v323_v48 = vmul.f32 %v565_v43, %v322_v47 }
 0x14b   : > { %v327_v50 = vsel %vm326_vm3, %v565_v43, %v323_v48 }
 0x14c   : > { %v329_v51 = vmul.f32 %v328_v49, %v327_v50 }
 0x14e   : > { %vm330_vm4 = vcmp.ge.f32.partialorder %v329_v51, 0.0  ;;  %v331_v52 = vmul.f32 0.2, %v329_v51 }
 0x150   : > { %v332_v53 = vsel %vm330_vm4, %v329_v51, %v331_v52 }
 0x151   : > { %333 = vst.msk [vmem:[%s136_s29] sm:$0xff] %vm304_vm0, %v332_v53 }
 0x152   : > { %593 = shalt.err (!%p590_p3)
}
 0x153   : > { %525 = dma.vmem_to_hbm [thread:$0]  (%p683_p5), %s348_s30, 128, %s350_s3, %s335_s13  }
 0x154 PF: > { %p531_p4 = scmp.ge.s32.totalorder %s628_s12, 2  ;;  %s361_s17 = sand.u32 1, %s616_s9  }
 0x155   : > { %s362_s21 = scalar_lea.sflag [#allocation3], %s361_s17 }
 0x156   : > { %p528_p7 = pnand %p531_p4, %p687_p6 }
 0x158   : > { %p529_p8 = pneg %p528_p7 }
 0x15a   : > { %611 = dma.done.wait (%p529_p8), %s362_s21, 128  }
 0x15b   : > { %613 = vsyncadd (%p529_p8), %s362_s21, 4294967168  ;;  %p12_p9 = scmp.ge.s32.totalorder %s670_s15, 4   ;;  %s772_s9 = smov %s620_s10 }
 0x15c   : > { %s773_s10 = smov %s624_s11  ;;  %s774_s11 = smov %s681_s18 }
 0x15d   : > { %s775_s12 = smov %s670_s15  ;;  %14 = sbr.rel (!%p12_p9) target bundleno = 3 (0x3), region = 63 }
 0x162   :  { %368 = vsyncpa [#allocation3], 1 }
 0x163   :  { %370 = vsyncpa [#allocation3 + $0x1], 1 }

</bundles_post_ra>
